<compile_context>
chip_gen: v7x
topology: tpu7x:2x2x1
jax: 0.10.0
libtpu: 0.0.40
codegen_flags: <defaults>
</compile_context>

<pallas_src>
import jax
import jax.numpy as jnp
from jax import lax
from jax.experimental import pallas as pl
from jax.experimental.pallas import tpu as pltpu


def _round_up(n, m):
    return ((n + m - 1) // m) * m


def _vae_loss_kernel(xr_ref, x_ref, mu_ref, lv_ref, out_ref, acc_ref):
    i = pl.program_id(0)          # row-block (parallel)
    j = pl.program_id(1)          # feature-block (reduction, "arbitrary")

    # Zero the tile-shaped accumulator at the start of every row block.
    @pl.when(j == 0)
    def _init():
        acc_ref[...] = jnp.zeros_like(acc_ref)

    # Hot loop: pure elementwise accumulation (VALU / vld slots only).
    diff = xr_ref[...] - x_ref[...]
    acc_ref[...] += diff * diff

    # Finalize once per row block: single big reduce + (for row block 0) the
    # KL term, scattered into the lane-dense partials output.
    @pl.when(j == pl.num_programs(1) - 1)
    def _finalize():
        partial = jnp.sum(acc_ref[...])

        mu = mu_ref[...]
        lv = lv_ref[...]
        kld = -0.5 * jnp.sum(1.0 + lv - mu * mu - jnp.exp(lv))
        total = partial + jnp.where(i == 0, kld, 0.0)

        rid = lax.broadcasted_iota(jnp.int32, out_ref.shape, 0)
        cid = lax.broadcasted_iota(jnp.int32, out_ref.shape, 1)
        out_ref[...] = jnp.where((rid == 0) & (cid == 0), total, 0.0)


def custom_loss(x_recon, x, mu, logvar, *, tb=256, tf=2048):
    """Pallas implementation of CustomLoss.forward (returns a scalar f32)."""
    # ---- reconstruction inputs: flatten + lane/sublane-dense zero padding ----
    B = x.shape[0]
    xr = x_recon.reshape(B, -1).astype(jnp.float32)
    xx = x.reshape(B, -1).astype(jnp.float32)
    F = xr.shape[1]

    TB = min(tb, _round_up(B, 8))      # multiple of 8
    TF = min(tf, _round_up(F, 128))    # multiple of 128
    Bp = _round_up(B, TB)
    Fp = _round_up(F, TF)
    if (Bp, Fp) != (B, F):
        xr = jnp.pad(xr, ((0, Bp - B), (0, Fp - F)))
        xx = jnp.pad(xx, ((0, Bp - B), (0, Fp - F)))

    # ---- latent inputs: zero padding (padded entries contribute 0 to KL) ----
    mu2 = mu.reshape(mu.shape[0], -1).astype(jnp.float32)
    lv2 = logvar.reshape(logvar.shape[0], -1).astype(jnp.float32)
    Mb, L = mu2.shape
    Mr = _round_up(Mb, 8)
    Lp = _round_up(L, 128)
    if (Mr, Lp) != (Mb, L):
        mu2 = jnp.pad(mu2, ((0, Mr - Mb), (0, Lp - L)))
        lv2 = jnp.pad(lv2, ((0, Mr - Mb), (0, Lp - L)))

    GR = Bp // TB
    GC = Fp // TF

    partials = pl.pallas_call(
        _vae_loss_kernel,
        out_shape=jax.ShapeDtypeStruct((8, 128 * GR), jnp.float32),
        grid_spec=pltpu.PrefetchScalarGridSpec(
            num_scalar_prefetch=0,
            grid=(GR, GC),
            in_specs=[
                pl.BlockSpec((TB, TF), lambda i, j: (i, j)),   # x_recon tiles
                pl.BlockSpec((TB, TF), lambda i, j: (i, j)),   # x tiles
                pl.BlockSpec((Mr, Lp), lambda i, j: (0, 0)),   # mu (resident)
                pl.BlockSpec((Mr, Lp), lambda i, j: (0, 0)),   # logvar (resident)
            ],
            out_specs=pl.BlockSpec((8, 128), lambda i, j: (0, i)),
            scratch_shapes=[pltpu.VMEM((TB, TF), jnp.float32)],
        ),
        compiler_params=pltpu.CompilerParams(
            dimension_semantics=("parallel", "arbitrary"),
            vmem_limit_bytes=32 * 1024 * 1024,
        ),
    )(xr, xx, mu2, lv2)

    # Tiny final sum over the per-row-block partials (8 * 128 * GR elements).
    return jnp.sum(partials)


def _reference_loss(x_recon, x, mu, logvar):
    loss_mse = jnp.sum((x_recon.astype(jnp.float32) - x.astype(jnp.float32)) ** 2)
    loss_kld = -0.5 * jnp.sum(1.0 + logvar - mu ** 2 - jnp.exp(logvar))
    return loss_mse + loss_kld


if __name__ == "__main__":
    key = jax.random.PRNGKey(0)
    k1, k2, k3, k4 = jax.random.split(key, 4)

    # Small VAE-like shapes: batch=2, 4x16x16 images, latent=32.
    batch, channels, spatial, latent = 2, 4, 16, 16
    latent_dim = 32

    x_recon = jax.random.normal(k1, (batch, channels, spatial, spatial), dtype=jnp.float32)
    x = jax.random.normal(k2, (batch, channels, spatial, spatial), dtype=jnp.float32)
    mu = jax.random.normal(k3, (batch, latent_dim), dtype=jnp.float32)
    logvar = 0.1 * jax.random.normal(k4, (batch, latent_dim), dtype=jnp.float32)

    loss = custom_loss(x_recon, x, mu, logvar)
    jax.block_until_ready(loss)

    ref = _reference_loss(x_recon, x, mu, logvar)
    assert jnp.allclose(loss, ref, rtol=1e-5, atol=1e-4), (loss, ref)

    print("KERNEL_OK")
</pallas_src>

<mosaic_0001>
module attributes {stable_mosaic.version = 11 : i64} {
  func.func @_vae_loss_kernel(%arg0: i32, %arg1: i32, %arg2: memref<8x1024xf32, #tpu.memory_space<vmem>>, %arg3: memref<8x1024xf32, #tpu.memory_space<vmem>>, %arg4: memref<8x128xf32, #tpu.memory_space<vmem>>, %arg5: memref<8x128xf32, #tpu.memory_space<vmem>>, %arg6: memref<8x128xf32, #tpu.memory_space<vmem>>, %arg7: memref<8x1024xf32, #tpu.memory_space<vmem>>) attributes {dimension_semantics = [#tpu.dimension_semantics<parallel>, #tpu.dimension_semantics<arbitrary>], iteration_bounds = array<i64: 1, 1>, scalar_prefetch = 0 : i64, scratch_operands = 1 : i64, tpu.core_type = #tpu.core_type<tc>, window_params = [{transform_indices = @transform_0, window_bounds = array<i64: 8, 1024>}, {transform_indices = @transform_1, window_bounds = array<i64: 8, 1024>}, {pipeline_mode = #tpu.pipeline_mode<synchronous>, transform_indices = @transform_2, window_bounds = array<i64: 8, 128>}, {pipeline_mode = #tpu.pipeline_mode<synchronous>, transform_indices = @transform_3, window_bounds = array<i64: 8, 128>}, {transform_indices = @transform_4, window_bounds = array<i64: 8, 128>}]} {
    %c0_i32 = arith.constant 0 : i32
    %0 = arith.cmpi eq, %arg1, %c0_i32 : i32
    %1 = arith.extui %0 : i1 to i32
    %c0_i32_0 = arith.constant 0 : i32
    %2 = arith.cmpi ne, %1, %c0_i32_0 : i32
    scf.if %2 {
      %cst = arith.constant 0.000000e+00 : f32
      %13 = vector.broadcast %cst : f32 to vector<8x1024xf32>
      %c0_10 = arith.constant 0 : index
      %c0_11 = arith.constant 0 : index
      %14 = vector.load %arg7[%c0_10, %c0_11] : memref<8x1024xf32, #tpu.memory_space<vmem>>, vector<8x1024xf32>
      tpu.vector_store %arg7[%c0_10, %c0_11], %13 {strides = array<i32>} : memref<8x1024xf32, #tpu.memory_space<vmem>>, vector<8x1024xf32>,
    } else {
    }
    %c0 = arith.constant 0 : index
    %c0_1 = arith.constant 0 : index
    %3 = vector.load %arg2[%c0, %c0_1] : memref<8x1024xf32, #tpu.memory_space<vmem>>, vector<8x1024xf32>
    %c0_2 = arith.constant 0 : index
    %c0_3 = arith.constant 0 : index
    %4 = vector.load %arg3[%c0_2, %c0_3] : memref<8x1024xf32, #tpu.memory_space<vmem>>, vector<8x1024xf32>
    %5 = arith.subf %3, %4 : vector<8x1024xf32>
    %c0_4 = arith.constant 0 : index
    %c0_5 = arith.constant 0 : index
    %6 = vector.load %arg7[%c0_4, %c0_5] : memref<8x1024xf32, #tpu.memory_space<vmem>>, vector<8x1024xf32>
    %7 = arith.mulf %5, %5 : vector<8x1024xf32>
    %8 = arith.addf %6, %7 : vector<8x1024xf32>
    %c0_6 = arith.constant 0 : index
    %c0_7 = arith.constant 0 : index
    %9 = vector.load %arg7[%c0_6, %c0_7] : memref<8x1024xf32, #tpu.memory_space<vmem>>, vector<8x1024xf32>
    tpu.vector_store %arg7[%c0_6, %c0_7], %8 {strides = array<i32>} : memref<8x1024xf32, #tpu.memory_space<vmem>>, vector<8x1024xf32>,
    %c0_i32_8 = arith.constant 0 : i32
    %10 = arith.cmpi eq, %arg1, %c0_i32_8 : i32
    %11 = arith.extui %10 : i1 to i32
    %c0_i32_9 = arith.constant 0 : i32
    %12 = arith.cmpi ne, %11, %c0_i32_9 : i32
    scf.if %12 {
      %c0_10 = arith.constant 0 : index
      %c0_11 = arith.constant 0 : index
      %13 = vector.load %arg7[%c0_10, %c0_11] : memref<8x1024xf32, #tpu.memory_space<vmem>>, vector<8x1024xf32>
      %14 = vector.shape_cast %13 : vector<8x1024xf32> to vector<1x8x1024xf32>
      %cst = arith.constant dense<0.000000e+00> : vector<1xf32>
      %15 = vector.multi_reduction <add>, %14, %cst [1, 2] : vector<1x8x1024xf32> to vector<1xf32>
      %16 = vector.shape_cast %15 : vector<1xf32> to vector<1x1x1xf32>
      %17 = vector.extract %16[0, 0, 0] : f32 from vector<1x1x1xf32>
      %c0_12 = arith.constant 0 : index
      %c0_13 = arith.constant 0 : index
      %18 = vector.load %arg4[%c0_12, %c0_13] : memref<8x128xf32, #tpu.memory_space<vmem>>, vector<8x128xf32>
      %c0_14 = arith.constant 0 : index
      %c0_15 = arith.constant 0 : index
      %19 = vector.load %arg5[%c0_14, %c0_15] : memref<8x128xf32, #tpu.memory_space<vmem>>, vector<8x128xf32>
      %cst_16 = arith.constant 1.000000e+00 : f32
      %20 = vector.broadcast %cst_16 : f32 to vector<8x128xf32>
      %21 = arith.addf %20, %19 : vector<8x128xf32>
      %22 = arith.mulf %18, %18 : vector<8x128xf32>
      %23 = arith.subf %21, %22 : vector<8x128xf32>
      %24 = math.exp %19 : vector<8x128xf32>
      %25 = arith.subf %23, %24 : vector<8x128xf32>
      %26 = vector.shape_cast %25 : vector<8x128xf32> to vector<1x8x128xf32>
      %cst_17 = arith.constant dense<0.000000e+00> : vector<1xf32>
      %27 = vector.multi_reduction <add>, %26, %cst_17 [1, 2] : vector<1x8x128xf32> to vector<1xf32>
      %28 = vector.shape_cast %27 : vector<1xf32> to vector<1x1x1xf32>
      %29 = vector.extract %28[0, 0, 0] : f32 from vector<1x1x1xf32>
      %cst_18 = arith.constant -5.000000e-01 : f32
      %30 = arith.mulf %cst_18, %29 : f32
      %c0_i32_19 = arith.constant 0 : i32
      %31 = arith.cmpi eq, %arg0, %c0_i32_19 : i32
      %cst_20 = arith.constant 0.000000e+00 : f32
      %32 = arith.select %31, %30, %cst_20 : f32
      %33 = arith.addf %17, %32 : f32
      %34 = tpu.iota {dimensions = array<i32: 0>} : vector<8x128xi32>
      %35 = tpu.iota {dimensions = array<i32: 1>} : vector<8x128xi32>
      %c0_i32_21 = arith.constant 0 : i32
      %36 = vector.broadcast %c0_i32_21 : i32 to vector<8x128xi32>
      %37 = arith.cmpi eq, %34, %36 : vector<8x128xi32>
      %c0_i32_22 = arith.constant 0 : i32
      %38 = vector.broadcast %c0_i32_22 : i32 to vector<8x128xi32>
      %39 = arith.cmpi eq, %35, %38 : vector<8x128xi32>
      %40 = arith.andi %37, %39 : vector<8x128xi1>
      %cst_23 = arith.constant 0.000000e+00 : f32
      %41 = vector.broadcast %33 : f32 to vector<8x128xf32>
      %42 = vector.broadcast %cst_23 : f32 to vector<8x128xf32>
      %43 = arith.select %40, %41, %42 : vector<8x128xi1>, vector<8x128xf32>
      %c0_24 = arith.constant 0 : index
      %c0_25 = arith.constant 0 : index
      %44 = vector.load %arg6[%c0_24, %c0_25] : memref<8x128xf32, #tpu.memory_space<vmem>>, vector<8x128xf32>
      tpu.vector_store %arg6[%c0_24, %c0_25], %43 {strides = array<i32>} : memref<8x128xf32, #tpu.memory_space<vmem>>, vector<8x128xf32>,
    } else {
    }
    return
  }
  func.func @transform_0(%arg0: i32, %arg1: i32) -> (i32, i32) {
    %c0_i32 = arith.constant 0 : i32
    return %arg0, %arg1 : i32, i32
  }
  func.func @transform_1(%arg0: i32, %arg1: i32) -> (i32, i32) {
    %c0_i32 = arith.constant 0 : i32
    return %arg0, %arg1 : i32, i32
  }
  func.func @transform_2(%arg0: i32, %arg1: i32) -> (i32, i32) {
    %c0_i32 = arith.constant 0 : i32
    %c0_i32_0 = arith.constant 0 : i32
    %c0_i32_1 = arith.constant 0 : i32
    return %c0_i32, %c0_i32_0 : i32, i32
  }
  func.func @transform_3(%arg0: i32, %arg1: i32) -> (i32, i32) {
    %c0_i32 = arith.constant 0 : i32
    %c0_i32_0 = arith.constant 0 : i32
    %c0_i32_1 = arith.constant 0 : i32
    return %c0_i32, %c0_i32_0 : i32, i32
  }
  func.func @transform_4(%arg0: i32, %arg1: i32) -> (i32, i32) {
    %c0_i32 = arith.constant 0 : i32
    %c0_i32_0 = arith.constant 0 : i32
    return %c0_i32, %arg0 : i32, i32
  }
}

</mosaic_0001>

<bundles_post_ra>
// kernel: tpu_custom_call.1
= control target key start
LH: loop header
LB: loop body
LE: loop exit
PB: predicated region body
PF: predicated region fallthrough
CT: control target
= control target key end

     0   :  { %9 = vsyncpa [#allocation4], 0  ;;  %s379_s0 = inlined_call_operand.hbm [shape: f32[8,1024], index: 0, kind: input, shape index: {}]   ;;  %s380_s1 = inlined_call_operand.hbm [shape: f32[8,1024], index: 1, kind: input, shape index: {}]   ;;  %s381_s2 = inlined_call_operand.hbm [shape: f32[8,128], index: 2, kind: input, shape index: {}]   ;;  %s382_s3 = inlined_call_operand.vmem [shape: f32[8,128], index: 3, kind: input, shape index: {}]   ;;  %s383_s4 = inlined_call_operand.hbm [shape: f32[8,128], index: 4, kind: output, shape index: {}]  }
   0x1   :  { %10 = vsyncpa [#allocation7], 0 }
   0x2   :  { %11 = vsyncpa [#allocation5], 0  ;;  %s299_s15 = smov [#allocation6]   ;;  %s300_s17 = smov [#allocation3]  }
   0x3   :  { %s28_s16 = sshll.u32 %s299_s15, 4  ;;  %s18_s18 = sshll.u32 %s300_s17, 4  ;;  %s29_s16 = int_to_ptr.vmem [resolvable:$true] %s28_s16  ;;  %s19_s18 = int_to_ptr.vmem [resolvable:$true] %s18_s18 }
   0x4   :  { %s205_s21 = scalar_lea.hbm %s380_s1, 1024 }
   0x5   :  { %p206_p0 = scmp.ne.s32.totalorder %s380_s1, %s205_s21  ;;  %p209_p1 = scmp.lt.u32.totalorder %s205_s21, %s380_s1 }
   0x7   :  { %p211_p2 = pnand %p209_p1, %p206_p0 }
   0x9   :  { %214 = shalt.err (!%p211_p2)
}
   0xa   :  { %s215_s26 = scalar_lea.vmem %s29_s16, 1024  ;;  %p220_p4 = scmp.lt.s32.totalorder %s29_s16, %s29_s16 }
   0xb   :  { %p216_p3 = scmp.ne.s32.totalorder %s29_s16, %s215_s26  ;;  %p221_p5 = scmp.lt.s32.totalorder %s215_s26, %s215_s26 }
   0xd   :  { %p222_p6 = por %p221_p5, %p220_p4 }
   0xf   :  { %p223_p7 = pnand %p222_p6, %p216_p3 }
  0x11   :  { %226 = shalt.err (!%p223_p7)
}
  0x12   :  { %31 = dma.hbm_to_vmem [thread:$0]  %s380_s1, 1024, %s29_s16, [#allocation7]  }
  0x13   :  { %s227_s5 = scalar_lea.hbm %s379_s0, 1024 }
  0x14   :  { %p228_p8 = scmp.ne.s32.totalorder %s379_s0, %s227_s5  ;;  %p231_p9 = scmp.lt.u32.totalorder %s227_s5, %s379_s0 }
  0x16   :  { %p233_p10 = pnand %p231_p9, %p228_p8 }
  0x18   :  { %236 = shalt.err (!%p233_p10)
}
  0x19   :  { %s237_s10 = scalar_lea.vmem %s19_s18, 1024  ;;  %p242_p12 = scmp.lt.s32.totalorder %s19_s18, %s19_s18 }
  0x1a   :  { %p238_p11 = scmp.ne.s32.totalorder %s19_s18, %s237_s10  ;;  %p243_p13 = scmp.lt.s32.totalorder %s237_s10, %s237_s10 }
  0x1c   :  { %p244_p0 = por %p243_p13, %p242_p12 }
  0x1e   :  { %p245_p1 = pnand %p244_p0, %p238_p11 }
  0x20   :  { %248 = shalt.err (!%p245_p1)
}
  0x21   :  { %21 = dma.hbm_to_vmem [thread:$0]  %s379_s0, 1024, %s19_s18, [#allocation4]  }
  0x22   :  { %s301_s12 = smov [#allocation8]   ;;  %s249_s16 = scalar_lea.hbm %s381_s2, 128 }
  0x23   :  { %s38_s13 = sshll.u32 %s301_s12, 4  ;;  %p250_p2 = scmp.ne.s32.totalorder %s381_s2, %s249_s16  ;;  %s39_s13 = int_to_ptr.vmem [resolvable:$true] %s38_s13 }
  0x24   :  { %p253_p3 = scmp.lt.u32.totalorder %s249_s16, %s381_s2 }
  0x26   :  { %p255_p4 = pnand %p253_p3, %p250_p2 }
  0x28   :  { %258 = shalt.err (!%p255_p4)
}
  0x29   :  { %s259_s22 = scalar_lea.vmem %s39_s13, 128  ;;  %p264_p6 = scmp.lt.s32.totalorder %s39_s13, %s39_s13 }
  0x2a   :  { %p260_p5 = scmp.ne.s32.totalorder %s39_s13, %s259_s22  ;;  %p265_p7 = scmp.lt.s32.totalorder %s259_s22, %s259_s22 }
  0x2c   :  { %p266_p8 = por %p265_p7, %p264_p6 }
  0x2e   :  { %p267_p9 = pnand %p266_p8, %p260_p5 }
  0x30   :  { %270 = shalt.err (!%p267_p9)
}
  0x31   :  { %41 = dma.hbm_to_vmem [thread:$0]  %s381_s2, 128, %s39_s13, [#allocation7]  }
  0x32   :  { %293 = dma.done.wait [#allocation4], 1024  }
  0x33   :  { %294 = vsyncadd [#allocation4], 4294966272 }
  0x34   :  { %295 = dma.done.wait [#allocation7], 1152  }
  0x35   :  { %296 = vsyncadd [#allocation7], 4294966144  ;;  %v65_v0 = vld [vmem:[#allocation3] sm:$0xff]  ;;  %v66_v1 = vld [vmem:[#allocation3 + $0x8] sm:$0xff]  ;;  %v169_v61 = vlaneseq  ;;  %s302_s26 = smov [#allocation9]  }
  0x36   :  { %v67_v2 = vld [vmem:[#allocation3 + $0x10] sm:$0xff]  ;;  %v68_v3 = vld [vmem:[#allocation3 + $0x18] sm:$0xff]  ;;  %v69_v4 = vld [vmem:[#allocation3 + $0x20] sm:$0xff]  ;;  %s185_s27 = sshll.u32 %s302_s26, 4  ;;  %s186_s27 = int_to_ptr.vmem [resolvable:$true] %s185_s27 }
  0x37   :  { %v73_v5 = vld [vmem:[#allocation6] sm:$0xff]  ;;  %v74_v6 = vld [vmem:[#allocation6 + $0x8] sm:$0xff]  ;;  %v75_v7 = vld [vmem:[#allocation6 + $0x10] sm:$0xff]  ;;  %v170_v62 = vshrl.u32 %v169_v61, 7  ;;  %v172_v63 = vand.u32 127, %v169_v61  ;;  %s271_s29 = scalar_lea.vmem %s186_s27, 128  ;;  %p276_p11 = scmp.lt.s32.totalorder %s186_s27, %s186_s27 }
  0x38   :  { %v76_v8 = vld [vmem:[#allocation6 + $0x18] sm:$0xff]  ;;  %v81_v9 = vsub.f32 %v65_v0, %v73_v5  ;;  %v77_v10 = vld [vmem:[#allocation6 + $0x20] sm:$0xff]  ;;  %v82_v11 = vsub.f32 %v66_v1, %v74_v6  ;;  %v83_v12 = vsub.f32 %v67_v2, %v75_v7  ;;  %v70_v14 = vld [vmem:[#allocation3 + $0x28] sm:$0xff]  ;;  %p272_p10 = scmp.ne.s32.totalorder %s186_s27, %s271_s29  ;;  %p277_p12 = scmp.lt.s32.totalorder %s271_s29, %s271_s29 }
  0x39   :  { %v84_v13 = vsub.f32 %v68_v3, %v76_v8  ;;  %v78_v15 = vld [vmem:[#allocation6 + $0x28] sm:$0xff]  ;;  %v149_v17 = vld [vmem:[%s382_s3] sm:$0xff]  ;;  %v85_v18 = vsub.f32 %v69_v4, %v77_v10  ;;  %v71_v21 = vld [vmem:[#allocation3 + $0x30] sm:$0xff]  ;;  %vm173_vm0 = vcmp.eq.s32.totalorder %v170_v62, 0  ;;  %vm174_vm1 = vcmp.eq.s32.totalorder %v172_v63, 0 }
  0x3a   :  { %v97_v16 = vmul.f32 %v81_v9, %v81_v9  ;;  %v98_v19 = vmul.f32 %v82_v11, %v82_v11  ;;  %v99_v20 = vmul.f32 %v83_v12, %v83_v12  ;;  %v79_v22 = vld [vmem:[#allocation6 + $0x30] sm:$0xff]  ;;  %v86_v23 = vsub.f32 %v70_v14, %v78_v15  ;;  %v72_v27 = vld [vmem:[#allocation3 + $0x38] sm:$0xff]  ;;  %v148_v32 = vld [vmem:[#allocation8] sm:$0xff]  ;;  %p278_p13 = por %p277_p12, %p276_p11 }
  0x3b   :  { %v100_v24 = vmul.f32 %v84_v13, %v84_v13  ;;  %v153_v26 = vmul.f32 1.442695, %v149_v17  ;;  %v80_v28 = vld [vmem:[#allocation6 + $0x38] sm:$0xff]  ;;  %v87_v29 = vsub.f32 %v71_v21, %v79_v22  ;;  %v101_v30 = vmul.f32 %v85_v18, %v85_v18  ;;  %vm175_vm2 = vmand %vm173_vm0, %vm174_vm1 }
  0x3c   :  { %v132_v25 = vadd.f32 %v98_v19, %v97_v16  ;;  %v88_v33 = vsub.f32 %v72_v27, %v80_v28  ;;  %v102_v34 = vmul.f32 %v86_v23, %v86_v23  ;;  %v150_v38 = vadd.f32 1.0, %v149_v17  ;;  %p279_p0 = pnand %p278_p13, %p272_p10 }
  0x3d   :  { %203 = vpow2.f32 %v153_v26  ;;  %v103_v36 = vmul.f32 %v87_v29, %v87_v29  ;;  %v151_v39 = vmul.f32 %v148_v32, %v148_v32 }
  0x3e   :  { %v133_v31 = vadd.f32 %v132_v25, %v99_v20  ;;  %v104_v40 = vmul.f32 %v88_v33, %v88_v33 }
  0x3f   :  { %v152_v43 = vsub.f32 %v150_v38, %v151_v39 }
  0x40   :  { %v134_v35 = vadd.f32 %v133_v31, %v100_v24 }
  0x42   :  { %v135_v37 = vadd.f32 %v134_v35, %v101_v30 }
  0x44   :  { %v136_v41 = vadd.f32 %v135_v37, %v102_v34 }
  0x46   :  { %v137_v42 = vadd.f32 %v136_v41, %v103_v36 }
  0x47   :  { %v204_v44 = vpop.eup %203 }
  0x48   :  { %v138_v45 = vadd.f32 %v137_v42, %v104_v40  ;;  %v155_v46 = vsub.f32 %v152_v43, %v204_v44 }
  0x4a   :  { %139 = vadd.xlane.f32.xlu0 %v138_v45 }
  0x4e   :  { %156 = vadd.xlane.f32.xlu0 %v155_v46 }
  0xd7   :  { %v140_v47 = vpop.xlane.xlu0 %139 }
  0xd8   :  { %v141_v48 = vrot.slane %v140_v47, 4 }
  0xda   :  { %v142_v49 = vadd.f32 %v141_v48, %v140_v47 }
  0xdb   :  { %v157_v50 = vpop.xlane.xlu0 %156 }
  0xdc   :  { %v143_v51 = vrot.slane %v142_v49, 2  ;;  %v158_v52 = vrot.slane %v157_v50, 4 }
  0xde   :  { %v159_v53 = vadd.f32 %v158_v52, %v157_v50  ;;  %v144_v54 = vadd.f32 %v143_v51, %v142_v49 }
  0xe0   :  { %v160_v55 = vrot.slane %v159_v53, 2  ;;  %v145_v56 = vrot.slane %v144_v54, 1 }
  0xe2   :  { %v161_v57 = vadd.f32 %v160_v55, %v159_v53  ;;  %v146_v58 = vadd.f32 %v145_v56, %v144_v54 }
  0xe4   :  { %195 = vpush %v146_v58  ;;  %v162_v59 = vrot.slane %v161_v57, 1 }
  0xe6   :  { %v163_v60 = vadd.f32 %v162_v59, %v161_v57 }
  0xe8   :  { %197 = vpush %v163_v60 }
 0x115   :  { %s196_s3 = spop %195 }
 0x119   :  { %s198_s24 = spop %197 }
 0x11a   :  { %s165_s25 = smul.f32 -0.5, %s198_s24 }
 0x11c   :  { %s168_s28 = sadd.f32 %s196_s3, %s165_s25 }
 0x11e   :  { %v176_v0 = vstv %s168_s28 }
 0x11f   :  { %v177_v1 = vsel %vm175_vm2, %v176_v0, 0.0 }
 0x120   :  { %178 = vst [vmem:[#allocation9] sm:$0xff] %v177_v1 }
 0x121   :  { %282 = shalt.err (!%p279_p0)
}
 0x122   :  { %s283_s6 = scalar_lea.hbm %s383_s4, 128 }
 0x123   :  { %p284_p1 = scmp.ne.s32.totalorder %s383_s4, %s283_s6  ;;  %p287_p2 = scmp.lt.u32.totalorder %s283_s6, %s383_s4 }
 0x125   :  { %p289_p3 = pnand %p287_p2, %p284_p1 }
 0x127   :  { %292 = shalt.err (!%p289_p3)
}
 0x128   :  { %188 = dma.vmem_to_hbm [thread:$0]  %s186_s27, 128, %s383_s4, [#allocation5]  }
 0x129   :  { %297 = dma.done.wait [#allocation5], 128  }
 0x12a   :  { %298 = vsyncadd [#allocation5], 4294967168 }
 0x12b   :  { %192 = vsyncpa [#allocation4], 1 }
 0x12c   :  { %193 = vsyncpa [#allocation7], 1 }
 0x12d   :  { %194 = vsyncpa [#allocation5], 1 }

</bundles_post_ra>
